<compile_context>
chip_gen: v7x
topology: tpu7x:2x2x1
jax: 0.10.0
libtpu: 0.0.40
codegen_flags: <defaults>
</compile_context>

<pallas_src>
import functools

import jax
import jax.numpy as jnp
from jax.experimental import pallas as pl
from jax.experimental.pallas import tpu as pltpu


def _round_up(a, m):
    return ((a + m - 1) // m) * m


def _fused_mlp_kernel(x_ref, w1_ref, b1_ref, w2_ref, b2_ref, out_ref, *, d_out):
    """One batch tile: x(TB, D_in) -> [mean | std](TB, 2*d_out)."""
    x = x_ref[...]

    # Fused layer 1 for both heads: (TB, 2H), ReLU on the VPU.
    h = jnp.dot(x, w1_ref[...], preferred_element_type=jnp.float32) + b1_ref[...]
    h = jnp.maximum(h, 0.0)

    # Fused (block-diagonal) layer 2: (TB, 2*d_out) = [mean | z]
    y = jnp.dot(h, w2_ref[...], preferred_element_type=jnp.float32) + b2_ref[...]

    # Numerically stable softplus on all lanes (EUP), then lane-select:
    # left half (mean) passes through, right half (std) gets softplus.
    sp = jnp.log1p(jnp.exp(-jnp.abs(y))) + jnp.maximum(y, 0.0)
    col = jax.lax.broadcasted_iota(jnp.int32, y.shape, dimension=1)
    out_ref[...] = jnp.where(col >= d_out, sp, y).astype(out_ref.dtype)


@functools.partial(jax.jit, static_argnames=("batch_tile",))
def starting_mlp_x(x, params, *, batch_tile=1024):
    """x: (B, D_in) float32. params: dict of per-head weights/biases.

    Returns (mean, std), each (B, D_out).
    """
    B, D_in = x.shape
    H = params["w1m"].shape[1]
    D_out = params["w2m"].shape[1]

    # ---- Fuse the two heads' parameters (4 arrays instead of 8) ----
    w1 = jnp.concatenate([params["w1m"], params["w1s"]], axis=1)      # (D_in, 2H)
    b1 = jnp.concatenate([params["b1m"], params["b1s"]], axis=1)      # (1, 2H)
    w2 = jnp.zeros((2 * H, 2 * D_out), jnp.float32)
    w2 = w2.at[:H, :D_out].set(params["w2m"])
    w2 = w2.at[H:, D_out:].set(params["w2s"])                         # block-diag (2H, 2*D_out)
    b2 = jnp.concatenate([params["b2m"], params["b2s"]], axis=1)      # (1, 2*D_out)

    # ---- Batch tiling: multiple of 8 sublanes, capped tile size ----
    TB = min(batch_tile, _round_up(B, 8))
    B_pad = _round_up(B, TB)
    x_p = x if B_pad == B else jnp.pad(x, ((0, B_pad - B), (0, 0)))

    kernel = functools.partial(_fused_mlp_kernel, d_out=D_out)

    out = pl.pallas_call(
        kernel,
        out_shape=jax.ShapeDtypeStruct((B_pad, 2 * D_out), jnp.float32),
        grid=(B_pad // TB,),
        in_specs=[
            pl.BlockSpec((TB, D_in), lambda i: (i, 0)),   # batch-tiled input
            pl.BlockSpec(w1.shape, lambda i: (0, 0)),     # params: VMEM-resident
            pl.BlockSpec(b1.shape, lambda i: (0, 0)),
            pl.BlockSpec(w2.shape, lambda i: (0, 0)),
            pl.BlockSpec(b2.shape, lambda i: (0, 0)),
        ],
        out_specs=pl.BlockSpec((TB, 2 * D_out), lambda i: (i, 0)),  # fused [mean|std] slab
        compiler_params=pltpu.CompilerParams(
            dimension_semantics=("parallel",),            # megacore-shard the batch axis
        ),
        cost_estimate=pl.CostEstimate(
            flops=2 * B_pad * (D_in * 2 * H + 2 * H * 2 * D_out),
            transcendentals=2 * B_pad * 2 * D_out,
            bytes_accessed=4 * (B_pad * D_in + B_pad * 2 * D_out
                                + D_in * 2 * H + 2 * H * 2 * D_out),
        ),
    )(x_p, w1, b1, w2, b2)

    mean = out[:B, :D_out]
    std = out[:B, D_out:]
    return mean, std


def init_params(key, input_size, output_size, hidden=12):
    """Deterministic synthetic parameters (stored as (in_features, out_features)
    so the kernel computes x @ W + b, matching nn.Linear)."""
    ks = jax.random.split(key, 8)
    scale_in = 1.0 / jnp.sqrt(input_size)
    scale_h = 1.0 / jnp.sqrt(hidden)
    return {
        # mean head
        "w1m": jax.random.uniform(ks[0], (input_size, hidden), jnp.float32, -scale_in, scale_in),
        "b1m": jax.random.uniform(ks[1], (1, hidden), jnp.float32, -scale_in, scale_in),
        "w2m": jax.random.uniform(ks[2], (hidden, output_size), jnp.float32, -scale_h, scale_h),
        "b2m": jax.random.uniform(ks[3], (1, output_size), jnp.float32, -scale_h, scale_h),
        # std head
        "w1s": jax.random.uniform(ks[4], (input_size, hidden), jnp.float32, -scale_in, scale_in),
        "b1s": jax.random.uniform(ks[5], (1, hidden), jnp.float32, -scale_in, scale_in),
        "w2s": jax.random.uniform(ks[6], (hidden, output_size), jnp.float32, -scale_h, scale_h),
        "b2s": jax.random.uniform(ks[7], (1, output_size), jnp.float32, -scale_h, scale_h),
    }


def reference(x, p):
    """Pure-JAX reference matching the PyTorch forward."""
    h_m = jnp.maximum(x @ p["w1m"] + p["b1m"], 0.0)
    mean = h_m @ p["w2m"] + p["b2m"]
    h_s = jnp.maximum(x @ p["w1s"] + p["b1s"], 0.0)
    z = h_s @ p["w2s"] + p["b2s"]
    std = jax.nn.softplus(z)
    return mean, std


if __name__ == "__main__":
    key = jax.random.PRNGKey(0)
    k_x, k_p, k_x2 = jax.random.split(key, 3)

    B, input_size, output_size = 8, 16, 4
    x = jax.random.normal(k_x, (B, input_size), jnp.float32)
    params = init_params(k_p, input_size, output_size)

    # Small-shape run (single tile).
    mean, std = starting_mlp_x(x, params)
    jax.block_until_ready((mean, std))
    mean_ref, std_ref = reference(x, params)
    assert mean.shape == (B, output_size) and std.shape == (B, output_size)
    assert jnp.allclose(mean, mean_ref, atol=1e-5, rtol=1e-5)
    assert jnp.allclose(std, std_ref, atol=1e-5, rtol=1e-5)
    assert bool(jnp.all(std > 0.0))

    # Multi-tile run (exercises the batch grid + padding path).
    B2 = 300
    x2 = jax.random.normal(k_x2, (B2, input_size), jnp.float32)
    mean2, std2 = starting_mlp_x(x2, params, batch_tile=128)
    jax.block_until_ready((mean2, std2))
    mean2_ref, std2_ref = reference(x2, params)
    assert mean2.shape == (B2, output_size) and std2.shape == (B2, output_size)
    assert jnp.allclose(mean2, mean2_ref, atol=1e-5, rtol=1e-5)
    assert jnp.allclose(std2, std2_ref, atol=1e-5, rtol=1e-5)
    assert bool(jnp.all(std2 > 0.0))

    print("KERNEL_OK")
</pallas_src>

<mosaic_0001>
module attributes {stable_mosaic.version = 11 : i64} {
  func.func @_fused_mlp_kernel(%arg0: i32, %arg1: memref<8x16xf32, #tpu.memory_space<vmem>>, %arg2: memref<16x24xf32, #tpu.memory_space<vmem>>, %arg3: memref<1x24xf32, #tpu.memory_space<vmem>>, %arg4: memref<24x8xf32, #tpu.memory_space<vmem>>, %arg5: memref<1x8xf32, #tpu.memory_space<vmem>>, %arg6: memref<8x8xf32, #tpu.memory_space<vmem>>) attributes {dimension_semantics = [#tpu.dimension_semantics<parallel>], iteration_bounds = array<i64: 1>, scalar_prefetch = 0 : i64, scratch_operands = 0 : i64, tpu.core_type = #tpu.core_type<tc>, window_params = [{transform_indices = @transform_0, window_bounds = array<i64: 8, 16>}, {pipeline_mode = #tpu.pipeline_mode<synchronous>, transform_indices = @transform_1, window_bounds = array<i64: 16, 24>}, {pipeline_mode = #tpu.pipeline_mode<synchronous>, transform_indices = @transform_2, window_bounds = array<i64: 1, 24>}, {pipeline_mode = #tpu.pipeline_mode<synchronous>, transform_indices = @transform_3, window_bounds = array<i64: 24, 8>}, {pipeline_mode = #tpu.pipeline_mode<synchronous>, transform_indices = @transform_4, window_bounds = array<i64: 1, 8>}, {transform_indices = @transform_5, window_bounds = array<i64: 8, 8>}]} {
    %c0 = arith.constant 0 : index
    %c0_0 = arith.constant 0 : index
    %0 = vector.load %arg1[%c0, %c0_0] : memref<8x16xf32, #tpu.memory_space<vmem>>, vector<8x16xf32>
    %c0_1 = arith.constant 0 : index
    %c0_2 = arith.constant 0 : index
    %1 = vector.load %arg2[%c0_1, %c0_2] : memref<16x24xf32, #tpu.memory_space<vmem>>, vector<16x24xf32>
    %cst = arith.constant dense<0.000000e+00> : vector<8x24xf32>
    %2 = tpu.matmul %0, %1, %cst {dimension_numbers = #tpu.dot_dimension_numbers<[1], [0], [0], [1], [0, 0, 1, 1], [], []>} : vector<8x16xf32>, vector<16x24xf32>, vector<8x24xf32> -> vector<8x24xf32>
    %c0_3 = arith.constant 0 : index
    %c0_4 = arith.constant 0 : index
    %3 = vector.load %arg3[%c0_3, %c0_4] : memref<1x24xf32, #tpu.memory_space<vmem>>, vector<1x24xf32>
    %4 = vector.broadcast %3 : vector<1x24xf32> to vector<8x24xf32>
    %5 = arith.addf %2, %4 : vector<8x24xf32>
    %cst_5 = arith.constant 0.000000e+00 : f32
    %6 = vector.broadcast %cst_5 : f32 to vector<8x24xf32>
    %7 = arith.maximumf %5, %6 : vector<8x24xf32>
    %c0_6 = arith.constant 0 : index
    %c0_7 = arith.constant 0 : index
    %8 = vector.load %arg4[%c0_6, %c0_7] : memref<24x8xf32, #tpu.memory_space<vmem>>, vector<24x8xf32>
    %cst_8 = arith.constant dense<0.000000e+00> : vector<8x8xf32>
    %9 = tpu.matmul %7, %8, %cst_8 {dimension_numbers = #tpu.dot_dimension_numbers<[1], [0], [0], [1], [0, 0, 1, 1], [], []>} : vector<8x24xf32>, vector<24x8xf32>, vector<8x8xf32> -> vector<8x8xf32>
    %c0_9 = arith.constant 0 : index
    %c0_10 = arith.constant 0 : index
    %10 = vector.load %arg5[%c0_9, %c0_10] : memref<1x8xf32, #tpu.memory_space<vmem>>, vector<1x8xf32>
    %11 = vector.broadcast %10 : vector<1x8xf32> to vector<8x8xf32>
    %12 = arith.addf %9, %11 : vector<8x8xf32>
    %13 = math.absf %12 : vector<8x8xf32>
    %cst_11 = arith.constant 0.000000e+00 : f32
    %14 = vector.broadcast %cst_11 : f32 to vector<8x8xf32>
    %15 = arith.subf %14, %13 : vector<8x8xf32>
    %16 = math.exp %15 : vector<8x8xf32>
    %17 = math.log1p %16 : vector<8x8xf32>
    %cst_12 = arith.constant 0.000000e+00 : f32
    %18 = vector.broadcast %cst_12 : f32 to vector<8x8xf32>
    %19 = arith.maximumf %12, %18 : vector<8x8xf32>
    %20 = arith.addf %17, %19 : vector<8x8xf32>
    %21 = tpu.iota {dimensions = array<i32: 1>} : vector<8x8xi32>
    %c4_i32 = arith.constant 4 : i32
    %22 = vector.broadcast %c4_i32 : i32 to vector<8x8xi32>
    %23 = arith.cmpi sge, %21, %22 : vector<8x8xi32>
    %24 = arith.select %23, %20, %12 : vector<8x8xi1>, vector<8x8xf32>
    %c0_13 = arith.constant 0 : index
    %c0_14 = arith.constant 0 : index
    %25 = vector.load %arg6[%c0_13, %c0_14] : memref<8x8xf32, #tpu.memory_space<vmem>>, vector<8x8xf32>
    tpu.vector_store %arg6[%c0_13, %c0_14], %24 {strides = array<i32>} : memref<8x8xf32, #tpu.memory_space<vmem>>, vector<8x8xf32>,
    return
  }
  func.func @transform_0(%arg0: i32) -> (i32, i32) {
    %c0_i32 = arith.constant 0 : i32
    %c0_i32_0 = arith.constant 0 : i32
    return %arg0, %c0_i32 : i32, i32
  }
  func.func @transform_1(%arg0: i32) -> (i32, i32) {
    %c0_i32 = arith.constant 0 : i32
    %c0_i32_0 = arith.constant 0 : i32
    %c0_i32_1 = arith.constant 0 : i32
    return %c0_i32, %c0_i32_0 : i32, i32
  }
  func.func @transform_2(%arg0: i32) -> (i32, i32) {
    %c0_i32 = arith.constant 0 : i32
    %c0_i32_0 = arith.constant 0 : i32
    %c0_i32_1 = arith.constant 0 : i32
    return %c0_i32, %c0_i32_0 : i32, i32
  }
  func.func @transform_3(%arg0: i32) -> (i32, i32) {
    %c0_i32 = arith.constant 0 : i32
    %c0_i32_0 = arith.constant 0 : i32
    %c0_i32_1 = arith.constant 0 : i32
    return %c0_i32, %c0_i32_0 : i32, i32
  }
  func.func @transform_4(%arg0: i32) -> (i32, i32) {
    %c0_i32 = arith.constant 0 : i32
    %c0_i32_0 = arith.constant 0 : i32
    %c0_i32_1 = arith.constant 0 : i32
    return %c0_i32, %c0_i32_0 : i32, i32
  }
  func.func @transform_5(%arg0: i32) -> (i32, i32) {
    %c0_i32 = arith.constant 0 : i32
    %c0_i32_0 = arith.constant 0 : i32
    return %arg0, %c0_i32 : i32, i32
  }
}

</mosaic_0001>

<bundles_post_ra>
// kernel: starting_mlp_x.1
= control target key start
LH: loop header
LB: loop body
LE: loop exit
PB: predicated region body
PF: predicated region fallthrough
CT: control target
= control target key end

     0   :  { %v254_v0 = vmov 0.0|0.0   ;;  %vm255_vm0 = vmmov 0   ;;  %v256_v3 = vmov 0.0   ;;  %vm30_vm1 = vcmask 130048   ;;  %s314_s1 = inlined_call_operand.vmem [shape: f32[16,24], index: 1, kind: input, shape index: {}]   ;;  %s315_s0 = inlined_call_operand.vmem [shape: f32[8,16], index: 0, kind: input, shape index: {}]   ;;  %s316_s3 = inlined_call_operand.vmem [shape: f32[24,8], index: 3, kind: input, shape index: {}]   ;;  %s317_s2 = inlined_call_operand.vmem [shape: f32[1,24], index: 2, kind: input, shape index: {}]   ;;  %s318_s4 = inlined_call_operand.vmem [shape: f32[1,8], index: 4, kind: input, shape index: {}]   ;;  %s319_s5 = inlined_call_operand.vmem [shape: f32[8,8], index: 5, kind: output, shape index: {}]  }
   0x1   :  { %241 = vmatprep.subr.bf16.mxu0 %v254_v0  ;;  %v21_v1 = vld [vmem:[%s314_s1] sm:$0xff]  ;;  %v22_v2 = vld [vmem:[%s314_s1 + $0x8] sm:$0xff]  ;;  %229 = vmatprep.mubr.msk.f32.mxu0 %vm255_vm0, %v256_v3  ;;  %v107_v9 = vld [vmem:[%s316_s3 + $0x10] sm:$0xff]  ;;  %vm115_vm2 = vcmask 195584   ;;  %v204_v25 = vlaneseq  ;;  %vm208_vm5 = vcmask 64512  }
   0x2   :  { %v242_v4 = vpack.c.bf16 %v22_v2, %v21_v1  ;;  %244 = vmatprep.subr.bf16.mxu1 %v254_v0  ;;  %238 = vmatprep.mubr.msk.f32.mxu1 %vm255_vm0, %v256_v3  ;;  %v20_v5 = vld [vmem:[%s315_s0] sm:$0xff]  ;;  %v106_v7 = vld [vmem:[%s316_s3 + $0x8] sm:$0xff] }
   0x3   :  { %v105_v6 = vld [vmem:[%s316_s3] sm:$0xff]  ;;  %v205_v28 = vand.u32 127, %v204_v25 }
   0x4   :  { %243 = vmatpush3.bf16.msra.mxu0 %v242_v4  ;;  %v245_v8 = vpack.c.bf16 %v106_v7, %v105_v6  ;;  %v214_v10 = vld [vmem:[%s317_s2] ss:$0 sm:$0xff] }
   0x5   :  { %v216_v15 = vld [vmem:[%s318_s4] ss:$0 sm:$0xff]  ;;  %vm206_vm4 = vcmp.ge.s32.totalorder %v205_v28, 4 }
   0x6   :  { %246 = vmatpush3.bf16.msra.mxu1 %v245_v8 }
   0x7   :  { %230 = vmatmul.mubr.msk.f32.vlgmr.msra.gmra.mrb[0].mxu0 %vm30_vm1, %v20_v5  ;;  %236 = vmatprep.subr.mxu1 %v256_v3 }
   0xa   :  { %237 = vmatpush3.msra.mxu1 %v107_v9 }
  0xda   :  { %v100_v11 = vpop.f32.mrb[0].mxu0 }
  0xdb   :  { %v101_v12 = vadd.f32 %v214_v10, %v100_v11  ;;  %v231_v13 = vpop.f32.mrb[1].mxu0 }
  0xdd   :  { %v104_v14 = vmax.f32 %v101_v12, 0.0 }
  0xdf   :  { %239 = vmatmul.mubr.msk.f32.vlgmr.msra.gmra.mrb[0].mxu1 %vm115_vm2, %v104_v14 }
 0x1b2   :  { %v185_v16 = vpop.f32.mrb[0].mxu1 }
 0x1b3   :  { %v186_v17 = vadd.f32 %v216_v15, %v185_v16  ;;  %v240_v18 = vpop.f32.mrb[1].mxu1 }
 0x1b5   :  { %v189_v19 = vand.u32 2147483647, %v186_v17  ;;  %v202_v32 = vmax.f32 %v186_v17, 0.0 }
 0x1b7   :  { %v190_v20 = vsub.f32 0.0, %v189_v19 }
 0x1b9   :  { %v191_v21 = vmul.f32 1.442695, %v190_v20 }
 0x1bb   :  { %250 = vpow2.f32 %v191_v21 }
 0x1c5   :  { %v251_v22 = vpop.eup %250 }
 0x1c6   :  { %v193_v23 = vadd.f32 1.0, %v251_v22  ;;  %v196_v24 = vmul.f32 -0.5, %v251_v22  ;;  %v199_v27 = vand.u32 2147483647, %v251_v22 }
 0x1c8   :  { %252 = vlog2.f32 %v193_v23  ;;  %v197_v26 = vadd.f32 1.0, %v196_v24  ;;  %vm200_vm3 = vcmp.lt.f32.partialorder %v199_v27, 0.0004427343 }
 0x1ca   :  { %v198_v31 = vmul.f32 %v251_v22, %v197_v26 }
 0x1d2   :  { %v253_v29 = vpop.eup %252 }
 0x1d3   :  { %v195_v30 = vmul.f32 0.6931472, %v253_v29 }
 0x1d5   :  { %v201_v33 = vsel %vm200_vm3, %v198_v31, %v195_v30 }
 0x1d6   :  { %v203_v34 = vadd.f32 %v202_v32, %v201_v33 }
 0x1d8   :  { %v207_v35 = vsel %vm206_vm4, %v203_v34, %v186_v17 }
 0x1d9   :  { %209 = vst.msk [vmem:[%s319_s5] sm:$0xff] %vm208_vm5, %v207_v35 }

</bundles_post_ra>
